<compile_context>
chip_gen: v7x
topology: tpu7x:2x2x1
jax: 0.10.0
libtpu: 0.0.40
codegen_flags: <defaults>
</compile_context>

<pallas_src>
import jax
import jax.numpy as jnp
from jax import lax
from jax.experimental import pallas as pl
from jax.experimental.pallas import tpu as pltpu

LN_EPS = 1e-12  # BERT-style LayerNorm eps used by these models


def _layernorm_affine(x, gamma, beta):
    """Single-pass LayerNorm over the last axis, followed by affine."""
    mean = jnp.mean(x, axis=-1, keepdims=True)
    mean_sq = jnp.mean(x * x, axis=-1, keepdims=True)
    var = mean_sq - mean * mean
    return (x - mean) * lax.rsqrt(var + LN_EPS) * gamma + beta


def tmodel_kernel_vmem_table(ids_ref, table_ref, pos_ref, gamma_ref, beta_ref,
                             out_ref):
    # ids_ref:   (padded_rows,) int32, SMEM (scalar prefetch) -- flat input_ids
    # table_ref: (V, H) f32, VMEM                              -- whole item table
    # pos_ref:   (L, H) f32, VMEM                               -- position rows
    # gamma/beta:(1, H) f32, VMEM                               -- LayerNorm affine
    # out_ref:   (rows, H) f32, VMEM                            -- this tile's rows
    rows, _ = out_ref.shape
    L = pos_ref.shape[0]
    n_seq = rows // L                      # static: tile covers whole sequences
    base = pl.program_id(0) * rows         # first flat row handled by this tile

    # Row gather straight out of the VMEM-resident table into the output tile.
    @pl.loop(0, rows)
    def _(r):
        idx = ids_ref[base + r]
        out_ref[pl.ds(r, 1), :] = table_ref[pl.ds(idx, 1), :]

    x = out_ref[...] + jnp.tile(pos_ref[...], (n_seq, 1))
    # TODO(synk): dropout is identity in eval mode; no training-mode RNG path here.
    out_ref[...] = _layernorm_affine(x, gamma_ref[...], beta_ref[...])


def tmodel_kernel_hbm_gather(ids_ref, item_hbm, pos_ref, gamma_ref, beta_ref,
                             out_ref, gather_buf, dma_sem):
    # item_hbm:   (V, H) f32, HBM (pl.ANY) -- item table never leaves HBM
    # gather_buf: (rows, H) f32, VMEM scratch
    # dma_sem:    scalar DMA semaphore
    rows, _ = gather_buf.shape
    L = pos_ref.shape[0]
    n_seq = rows // L
    base = pl.program_id(0) * rows

    # Issue one (1, H) row DMA per token id.
    @pl.loop(0, rows)
    def _(r):
        idx = ids_ref[base + r]
        pltpu.make_async_copy(
            item_hbm.at[pl.ds(idx, 1), :],
            gather_buf.at[pl.ds(r, 1), :],
            dma_sem,
        ).start()

    # Build the tiled position slab while the gathers are in flight.
    pos_tile = jnp.tile(pos_ref[...], (n_seq, 1))

    # Drain: all copies signal the same semaphore with identical sizes, so
    # `rows` same-sized waits complete exactly when every gather has landed.
    @pl.loop(0, rows)
    def _(r):
        pltpu.make_async_copy(
            item_hbm.at[pl.ds(0, 1), :],
            gather_buf.at[pl.ds(r, 1), :],
            dma_sem,
        ).wait()

    x = gather_buf[...] + pos_tile
    out_ref[...] = _layernorm_affine(x, gamma_ref[...], beta_ref[...])


def tmodel_forward(input_ids, item_table, pos_table, gamma, beta,
                   *, row_tile_target=1024,
                   vmem_table_budget_bytes=4 * 1024 * 1024):
    """input_ids: (B, L) int -> (B, L, H) float32."""
    B, L = input_ids.shape
    V, H = item_table.shape
    assert pos_table.shape[0] >= L and pos_table.shape[1] == H

    # OOV / padding-id guard: clamp into range (matches jnp.take clamp semantics).
    ids = jnp.clip(input_ids.astype(jnp.int32), 0, V - 1)
    pos = pos_table[:L].astype(jnp.float32)
    table = item_table.astype(jnp.float32)
    gamma2 = jnp.asarray(gamma, jnp.float32).reshape(1, H)
    beta2 = jnp.asarray(beta, jnp.float32).reshape(1, H)

    # Tile whole sequences per grid step (~row_tile_target rows); for multi-tile
    # configs keep rows_per_tile a multiple of 8 sublanes (a single full-array
    # tile is always legal regardless).
    seqs_per_tile = max(1, min(B, row_tile_target // max(L, 1)))
    while seqs_per_tile < B and (seqs_per_tile * L) % 8 != 0:
        seqs_per_tile += 1
    if (seqs_per_tile * L) % 8 != 0:
        seqs_per_tile = B
    num_tiles = pl.cdiv(B, seqs_per_tile)
    padded_B = num_tiles * seqs_per_tile
    if padded_B != B:
        ids = jnp.pad(ids, ((0, padded_B - B), (0, 0)))   # pad ids = 0 (valid row)
    rows_per_tile = seqs_per_tile * L
    ids_flat = ids.reshape(padded_B * L)

    common_in_specs = [
        pl.BlockSpec((L, H), lambda t, ids: (0, 0)),   # position rows 0..L-1
        pl.BlockSpec((1, H), lambda t, ids: (0, 0)),   # LN gamma
        pl.BlockSpec((1, H), lambda t, ids: (0, 0)),   # LN beta
    ]
    out_spec = pl.BlockSpec((rows_per_tile, H), lambda t, ids: (t, 0))

    table_bytes = V * H * table.dtype.itemsize
    if table_bytes <= vmem_table_budget_bytes:
        kernel = tmodel_kernel_vmem_table
        table_spec = pl.BlockSpec((V, H), lambda t, ids: (0, 0))   # table -> VMEM once
        scratch_shapes = []
    else:
        kernel = tmodel_kernel_hbm_gather
        table_spec = pl.BlockSpec(memory_space=pl.ANY)             # table stays in HBM
        scratch_shapes = [
            pltpu.VMEM((rows_per_tile, H), jnp.float32),
            pltpu.SemaphoreType.DMA(()),
        ]

    out2d = pl.pallas_call(
        kernel,
        out_shape=jax.ShapeDtypeStruct((padded_B * L, H), jnp.float32),
        grid_spec=pltpu.PrefetchScalarGridSpec(
            num_scalar_prefetch=1,                 # ids_flat -> SMEM
            grid=(num_tiles,),
            in_specs=[table_spec] + common_in_specs,
            out_specs=out_spec,
            scratch_shapes=scratch_shapes,
        ),
        compiler_params=pltpu.CompilerParams(
            dimension_semantics=("parallel",),      # v7x: split row tiles across 2 TCs
        ),
    )(ids_flat, table, pos, gamma2, beta2)

    return out2d[: B * L].reshape(B, L, H)


def tmodel_reference(input_ids, item_table, pos_table, gamma, beta):
    """Pure-JAX reference for correctness checking."""
    V = item_table.shape[0]
    ids = jnp.clip(input_ids, 0, V - 1)
    item_emb = jnp.take(item_table, ids, axis=0)                  # (B, L, H)
    L = input_ids.shape[1]
    seq_emb = item_emb + pos_table[None, :L, :]
    mean = jnp.mean(seq_emb, axis=-1, keepdims=True)
    var = jnp.mean((seq_emb - mean) ** 2, axis=-1, keepdims=True)
    normed = (seq_emb - mean) * lax.rsqrt(var + LN_EPS)
    return normed * gamma.reshape(1, 1, -1) + beta.reshape(1, 1, -1)


if __name__ == "__main__":
    # Small shapes consistent with the module: batch=2, seq=8, hidden=32, vocab=64.
    B, L, H, V = 2, 8, 32, 64
    initializer_range = 0.02

    key = jax.random.PRNGKey(0)
    k_ids, k_item, k_pos = jax.random.split(key, 3)

    input_ids = jax.random.randint(k_ids, (B, L), minval=0, maxval=V, dtype=jnp.int32)

    # init_weights: Embedding ~ N(0, initializer_range), LayerNorm weight=1, bias=0.
    item_table = initializer_range * jax.random.normal(k_item, (V, H), dtype=jnp.float32)
    pos_table = initializer_range * jax.random.normal(k_pos, (L, H), dtype=jnp.float32)
    gamma = jnp.ones((1, H), dtype=jnp.float32)
    beta = jnp.zeros((1, H), dtype=jnp.float32)

    ref = tmodel_reference(input_ids, item_table, pos_table, gamma, beta)

    # Default path at these shapes: VMEM-resident table gather.
    out = jax.block_until_ready(
        tmodel_forward(input_ids, item_table, pos_table, gamma, beta))
    assert out.shape == (B, L, H)
    assert jnp.allclose(out, ref, atol=1e-5, rtol=1e-5), "VMEM-path mismatch vs reference"

    # Large-vocab path: force the HBM DMA-gather kernel and re-check.
    out_hbm = jax.block_until_ready(
        tmodel_forward(input_ids, item_table, pos_table, gamma, beta,
                       vmem_table_budget_bytes=0))
    assert jnp.allclose(out_hbm, ref, atol=1e-5, rtol=1e-5), "HBM-path mismatch vs reference"

    print("KERNEL_OK")
</pallas_src>

<mosaic_0001>
module attributes {stable_mosaic.version = 11 : i64} {
  func.func @tmodel_kernel_vmem_table(%arg0: i32, %arg1: memref<16xi32, #tpu.memory_space<smem>>, %arg2: memref<64x32xf32, #tpu.memory_space<vmem>>, %arg3: memref<8x32xf32, #tpu.memory_space<vmem>>, %arg4: memref<1x32xf32, #tpu.memory_space<vmem>>, %arg5: memref<1x32xf32, #tpu.memory_space<vmem>>, %arg6: memref<16x32xf32, #tpu.memory_space<vmem>>) attributes {dimension_semantics = [#tpu.dimension_semantics<parallel>], iteration_bounds = array<i64: 1>, scalar_prefetch = 1 : i64, scratch_operands = 0 : i64, tpu.core_type = #tpu.core_type<tc>, window_params = [{pipeline_mode = #tpu.pipeline_mode<synchronous>, transform_indices = @transform_0, window_bounds = array<i64: 64, 32>}, {pipeline_mode = #tpu.pipeline_mode<synchronous>, transform_indices = @transform_1, window_bounds = array<i64: 8, 32>}, {pipeline_mode = #tpu.pipeline_mode<synchronous>, transform_indices = @transform_2, window_bounds = array<i64: 1, 32>}, {pipeline_mode = #tpu.pipeline_mode<synchronous>, transform_indices = @transform_3, window_bounds = array<i64: 1, 32>}, {transform_indices = @transform_4, window_bounds = array<i64: 16, 32>}]} {
    %c16_i32 = arith.constant 16 : i32
    %0 = arith.muli %arg0, %c16_i32 : i32
    %c0_i32 = arith.constant 0 : i32
    %c16_i32_0 = arith.constant 16 : i32
    %1 = arith.addi %c0_i32, %c16_i32_0 : i32
    %c1_i32 = arith.constant 1 : i32
    scf.for %arg7 = %c0_i32 to %1 step %c1_i32  : i32 {
      %c1_i32_15 = arith.constant 1 : i32
      %31 = arith.muli %arg7, %c1_i32_15 : i32
      %c0_i32_16 = arith.constant 0 : i32
      %32 = arith.addi %c0_i32_16, %31 : i32
      %33 = arith.addi %0, %32 : i32
      %34 = arith.index_cast %33 : i32 to index
      %35 = memref.load %arg1[%34] : memref<16xi32, #tpu.memory_space<smem>>
      %36 = arith.index_cast %35 : i32 to index
      %c0_17 = arith.constant 0 : index
      %37 = vector.load %arg2[%36, %c0_17] : memref<64x32xf32, #tpu.memory_space<vmem>>, vector<1x32xf32>
      %38 = arith.index_cast %32 : i32 to index
      %c0_18 = arith.constant 0 : index
      %39 = vector.load %arg6[%38, %c0_18] : memref<16x32xf32, #tpu.memory_space<vmem>>, vector<1x32xf32>
      tpu.vector_store %arg6[%38, %c0_18], %37 {strides = array<i32>} : memref<16x32xf32, #tpu.memory_space<vmem>>, vector<1x32xf32>,
    }
    %c16_i32_1 = arith.constant 16 : i32
    %c0 = arith.constant 0 : index
    %c0_2 = arith.constant 0 : index
    %2 = vector.load %arg6[%c0, %c0_2] : memref<16x32xf32, #tpu.memory_space<vmem>>, vector<16x32xf32>
    %c0_3 = arith.constant 0 : index
    %c0_4 = arith.constant 0 : index
    %3 = vector.load %arg3[%c0_3, %c0_4] : memref<8x32xf32, #tpu.memory_space<vmem>>, vector<8x32xf32>
    %4 = tpu.concatenate %3, %3 in 0 : vector<8x32xf32>, vector<8x32xf32> -> vector<16x32xf32>
    %5 = arith.addf %2, %4 : vector<16x32xf32>
    %c0_5 = arith.constant 0 : index
    %c0_6 = arith.constant 0 : index
    %6 = vector.load %arg4[%c0_5, %c0_6] : memref<1x32xf32, #tpu.memory_space<vmem>>, vector<1x32xf32>
    %c0_7 = arith.constant 0 : index
    %c0_8 = arith.constant 0 : index
    %7 = vector.load %arg5[%c0_7, %c0_8] : memref<1x32xf32, #tpu.memory_space<vmem>>, vector<1x32xf32>
    %cst = arith.constant dense<0.000000e+00> : vector<16xf32>
    %8 = vector.multi_reduction <add>, %5, %cst [1] : vector<16x32xf32> to vector<16xf32>
    %9 = vector.shape_cast %8 : vector<16xf32> to vector<16x1xf32>
    %cst_9 = arith.constant 3.200000e+01 : f32
    %10 = vector.broadcast %cst_9 : f32 to vector<16x1xf32>
    %11 = arith.divf %9, %10 : vector<16x1xf32>
    %12 = arith.mulf %5, %5 : vector<16x32xf32>
    %cst_10 = arith.constant dense<0.000000e+00> : vector<16xf32>
    %13 = vector.multi_reduction <add>, %12, %cst_10 [1] : vector<16x32xf32> to vector<16xf32>
    %14 = vector.shape_cast %13 : vector<16xf32> to vector<16x1xf32>
    %cst_11 = arith.constant 3.200000e+01 : f32
    %15 = vector.broadcast %cst_11 : f32 to vector<16x1xf32>
    %16 = arith.divf %14, %15 : vector<16x1xf32>
    %17 = arith.mulf %11, %11 : vector<16x1xf32>
    %18 = arith.subf %16, %17 : vector<16x1xf32>
    %19 = vector.broadcast %11 : vector<16x1xf32> to vector<16x32xf32>
    %20 = arith.subf %5, %19 : vector<16x32xf32>
    %cst_12 = arith.constant 9.99999996E-13 : f32
    %21 = vector.broadcast %cst_12 : f32 to vector<16x1xf32>
    %22 = arith.addf %18, %21 : vector<16x1xf32>
    %23 = math.rsqrt %22 : vector<16x1xf32>
    %24 = vector.broadcast %23 : vector<16x1xf32> to vector<16x32xf32>
    %25 = arith.mulf %20, %24 : vector<16x32xf32>
    %26 = vector.broadcast %6 : vector<1x32xf32> to vector<16x32xf32>
    %27 = arith.mulf %25, %26 : vector<16x32xf32>
    %28 = vector.broadcast %7 : vector<1x32xf32> to vector<16x32xf32>
    %29 = arith.addf %27, %28 : vector<16x32xf32>
    %c0_13 = arith.constant 0 : index
    %c0_14 = arith.constant 0 : index
    %30 = vector.load %arg6[%c0_13, %c0_14] : memref<16x32xf32, #tpu.memory_space<vmem>>, vector<16x32xf32>
    tpu.vector_store %arg6[%c0_13, %c0_14], %29 {strides = array<i32>} : memref<16x32xf32, #tpu.memory_space<vmem>>, vector<16x32xf32>,
    return
  }
  func.func @transform_0(%arg0: i32, %arg1: memref<16xi32, #tpu.memory_space<smem>>) -> (i32, i32) {
    %c0_i32 = arith.constant 0 : i32
    %c0_i32_0 = arith.constant 0 : i32
    %c0_i32_1 = arith.constant 0 : i32
    return %c0_i32, %c0_i32_0 : i32, i32
  }
  func.func @transform_1(%arg0: i32, %arg1: memref<16xi32, #tpu.memory_space<smem>>) -> (i32, i32) {
    %c0_i32 = arith.constant 0 : i32
    %c0_i32_0 = arith.constant 0 : i32
    %c0_i32_1 = arith.constant 0 : i32
    return %c0_i32, %c0_i32_0 : i32, i32
  }
  func.func @transform_2(%arg0: i32, %arg1: memref<16xi32, #tpu.memory_space<smem>>) -> (i32, i32) {
    %c0_i32 = arith.constant 0 : i32
    %c0_i32_0 = arith.constant 0 : i32
    %c0_i32_1 = arith.constant 0 : i32
    return %c0_i32, %c0_i32_0 : i32, i32
  }
  func.func @transform_3(%arg0: i32, %arg1: memref<16xi32, #tpu.memory_space<smem>>) -> (i32, i32) {
    %c0_i32 = arith.constant 0 : i32
    %c0_i32_0 = arith.constant 0 : i32
    %c0_i32_1 = arith.constant 0 : i32
    return %c0_i32, %c0_i32_0 : i32, i32
  }
  func.func @transform_4(%arg0: i32, %arg1: memref<16xi32, #tpu.memory_space<smem>>) -> (i32, i32) {
    %c0_i32 = arith.constant 0 : i32
    %c0_i32_0 = arith.constant 0 : i32
    return %arg0, %c0_i32 : i32, i32
  }
}

</mosaic_0001>

<bundles_post_ra>
// kernel: tpu_custom_call.1
= control target key start
LH: loop header
LB: loop body
LE: loop exit
PB: predicated region body
PF: predicated region fallthrough
CT: control target
= control target key end

     0   :  { %s250_s0 = inlined_call_operand.vmem [shape: s32[16], index: 0, kind: input, shape index: {}]   ;;  %s251_s1 = inlined_call_operand.vmem [shape: f32[64,32], index: 1, kind: input, shape index: {}]   ;;  %s252_s2 = inlined_call_operand.vmem [shape: f32[8,32], index: 2, kind: input, shape index: {}]   ;;  %s253_s3 = inlined_call_operand.vmem [shape: f32[1,32], index: 3, kind: input, shape index: {}]   ;;  %s254_s4 = inlined_call_operand.vmem [shape: f32[1,32], index: 4, kind: input, shape index: {}]   ;;  %s255_s5 = inlined_call_operand.hbm [shape: f32[16,32], index: 5, kind: output, shape index: {}]  }
   0x1   :  { %s10_s20 = sshll.u32 %s250_s0, 4  ;;  %s11_s20 = int_to_ptr.vmem [resolvable:$true] %s10_s20 }
   0x2   :  { %s137_s21 = scalar_lea.vmem %s11_s20, 16  ;;  %p142_p1 = scmp.lt.s32.totalorder %s11_s20, %s11_s20 }
   0x3   :  { %p138_p0 = scmp.ne.s32.totalorder %s11_s20, %s137_s21  ;;  %p143_p2 = scmp.lt.s32.totalorder %s137_s21, %s137_s21 }
   0x5   :  { %p144_p3 = por %p143_p2, %p142_p1 }
   0x7   :  { %p145_p4 = pnand %p144_p3, %p138_p0 }
   0x9   :  { %148 = shalt.err (!%p145_p4)  }
   0xa   :  { %s183_s22 = smov [#allocation3]  }
   0xb   :  { %13 = dma.vmem_to_smem %s11_s20, 16, %s183_s22, [#allocation2] }
   0xc   :  { %175 = dma.done.wait [#allocation2], 16 }
   0xd   :  { %176 = vsyncadd [#allocation2], 4294967280 }
   0xe   :  { %15 = sfence }
   0xf   :  { %16 = vsyncpa [#allocation5], 0  ;;  %s179_s23 = smov 0  }
  0x10 LB: > { %s33_s24 = sld [smem:[#allocation3 + %s181_s23]]  ;;  %vm37_vm0 = vcmask 253952   ;;  %s36_s27 = scalar_lea.vmem [#allocation4], %s181_s23  ;;  %s181_s23 = sphi %s179_s23, %s31_s23  }
  0x11   : > { %s31_s23 = sadd.s32 1, %s181_s23  }
  0x12   : > { %p28_p5 = scmp.ge.s32.totalorder %s31_s23, 16  }
  0x13   :  { %v41_v2 = vld [vmem:[%s252_s2] sm:$0xff] (%p28_p5)  ;;  %vm46_vm1 = vcmask (%p28_p5), 261120   ;;  %s184_s7 = smov (%p28_p5), [#allocation4]  }
  0x14   :  { %30 = sbr.rel (!%p28_p5) target bundleno = 16 (0x10), region = 45  ;;  %v119_v28 = vld [vmem:[%s253_s3] ss:$0 sm:$0xff] (%p28_p5)  ;;  %s101_s8 = sshll.u32 (%p28_p5), %s184_s7, 4  ;;  %s102_s8 = int_to_ptr.vmem [resolvable:$true] %s101_s8 }
  0x15   :  { %v120_v30 = vld [vmem:[%s254_s4] ss:$0 sm:$0xff] (%p28_p5)  ;;  %s149_s3 = scalar_lea.vmem (%p28_p5), %s102_s8, 256  ;;  %p154_p7 = scmp.lt.s32.totalorder (%p28_p5), %s102_s8, %s102_s8 }
  0x16   : > { %s34_s26 = scalar_lea.vmem %s251_s1, %s33_s24  ;;  %p150_p6 = scmp.ne.s32.totalorder (%p28_p5), %s102_s8, %s149_s3 }
  0x17   : > { %v35_v0 = vld [vmem:[%s34_s26] sm:$0x1]  ;;  %p155_p8 = scmp.lt.s32.totalorder (%p28_p5), %s149_s3, %s149_s3 }
  0x18   : > { %38 = vst.msk [vmem:[%s36_s27] sm:$0x1] %vm37_vm0, %v35_v0 }
  0x19   :  { %p156_p9 = por (%p28_p5), %p155_p8, %p154_p7 }
  0x1b   :  { %p157_p10 = pnand %p156_p9, %p150_p6 }
  0x1f   :  { %v39_v1 = vld [vmem:[#allocation4] sm:$0xff]  ;;  %v40_v3 = vld [vmem:[#allocation4 + $0x8] sm:$0xff] }
  0x20   :  { %v42_v4 = vadd.f32 %v41_v2, %v39_v1  ;;  %v43_v5 = vadd.f32 %v41_v2, %v40_v3 }
  0x22   :  { %v47_v6 = vsel %vm46_vm1, %v42_v4, 0.0  ;;  %v56_v7 = vmul.f32 %v42_v4, %v42_v4  ;;  %v57_v8 = vmul.f32 %v43_v5, %v43_v5  ;;  %v50_v10 = vsel %vm46_vm1, %v43_v5, 0.0 }
  0x23   :  { %48 = vadd.xlane.f32.xlu0 %v47_v6 }
  0x24   :  { %v58_v9 = vsel %vm46_vm1, %v56_v7, 0.0  ;;  %v61_v11 = vsel %vm46_vm1, %v57_v8, 0.0 }
  0x25   :  { %59 = vadd.xlane.f32.xlu1 %v58_v9 }
  0x27   :  { %51 = vadd.xlane.f32.xlu0 %v50_v10 }
  0x29   :  { %62 = vadd.xlane.f32.xlu1 %v61_v11 }
  0xb0   :  { %v49_v12 = vpop.xlane.xlu0 %48 }
  0xb1   :  { %v54_v13 = vmul.f32 0.03125, %v49_v12 }
  0xb2   :  { %v60_v14 = vpop.xlane.xlu1 %59 }
  0xb3   :  { %v66_v15 = vmul.f32 %v54_v13, %v54_v13  ;;  %v64_v16 = vmul.f32 0.03125, %v60_v14  ;;  %v70_v26 = vsub.f32 %v42_v4, %v54_v13 }
  0xb4   :  { %v52_v17 = vpop.xlane.xlu0 %51 }
  0xb5   :  { %v68_v18 = vsub.f32 %v64_v16, %v66_v15  ;;  %v55_v19 = vmul.f32 0.03125, %v52_v17 }
  0xb6   :  { %v63_v20 = vpop.xlane.xlu1 %62 }
  0xb7   :  { %v72_v21 = vadd.f32 1e-12, %v68_v18  ;;  %v67_v22 = vmul.f32 %v55_v19, %v55_v19  ;;  %v65_v23 = vmul.f32 0.03125, %v63_v20  ;;  %v71_v31 = vsub.f32 %v43_v5, %v55_v19 }
  0xb9   :  { %133 = vrsqrt.f32 %v72_v21  ;;  %v69_v24 = vsub.f32 %v65_v23, %v67_v22 }
  0xbb   :  { %v73_v25 = vadd.f32 1e-12, %v69_v24 }
  0xbd   :  { %135 = vrsqrt.f32 %v73_v25 }
  0xc3   :  { %v134_v27 = vpop.eup %133 }
  0xc4   :  { %v76_v29 = vmul.f32 %v134_v27, %v70_v26 }
  0xc6   :  { %v84_v32 = vmul.f32 %v119_v28, %v76_v29 }
  0xc7   :  { %v136_v33 = vpop.eup %135 }
  0xc8   :  { %v77_v34 = vmul.f32 %v136_v33, %v71_v31  ;;  %v92_v35 = vadd.f32 %v120_v30, %v84_v32 }
  0xca   :  { %v85_v36 = vmul.f32 %v119_v28, %v77_v34  ;;  %94 = vst.msk [vmem:[#allocation4] sm:$0xff] %vm46_vm1, %v92_v35 }
  0xcc   :  { %v93_v37 = vadd.f32 %v120_v30, %v85_v36 }
  0xce   :  { %95 = vst.msk [vmem:[#allocation4 + $0x8] sm:$0xff] %vm46_vm1, %v93_v37 }
  0xcf   :  { %160 = shalt.err (!%p157_p10)
}
  0xd0   :  { %s161_s10 = scalar_lea.hbm %s255_s5, 256 }
  0xd1   :  { %p162_p11 = scmp.ne.s32.totalorder %s255_s5, %s161_s10  ;;  %p165_p12 = scmp.lt.u32.totalorder %s161_s10, %s255_s5 }
  0xd3   :  { %p167_p13 = pnand %p165_p12, %p162_p11 }
  0xd5   :  { %170 = shalt.err (!%p167_p13)
}
  0xd6   :  { %s185_s15 = smov 128   ;;  %s186_s16 = smov 8  }
  0xd7   :  { %107 = dma.vmem_to_hbm [thread:$0]  %s102_s8, 256, %s255_s5, [#allocation5], %s185_s15, %s185_s15, %s186_s16  }
  0xd8   :  { %177 = dma.done.wait [#allocation5], 256  }
  0xd9   :  { %178 = vsyncadd [#allocation5], 4294967040 }
  0xda   :  { %111 = vsyncpa [#allocation5], 1 }

</bundles_post_ra>
